<compile_context>
chip_gen: v7x
topology: tpu7x:2x2x1
jax: 0.10.0
libtpu: 0.0.40
codegen_flags: <defaults>
</compile_context>

<pallas_src>
import functools

import numpy as np
import jax
import jax.numpy as jnp
from jax.experimental import pallas as pl
from jax.experimental.pallas import tpu as pltpu

EPS = 0.003

TILE_N_MAX = 4096   # safe on v5e (16 MiB scoped default, bumped to 32 MiB below),
                    # v6e (128 MiB physical) and v7x (64 MiB physical).
TILE_ALIGN = 1024   # multi-tile alignment: keeps output blocks (tile/128, 128)
                    # with a sublane count that is a multiple of 8.
MIN_TILE = 128      # single-tile alignment (lane-dense output rows).


def _round_up(x, m):
    return ((x + m - 1) // m) * m


def _choose_tiling(n, tile_n_req=None):
    """Pick (tile_n, n_pad). Guarantees n_pad % 128 == 0 and either
    tile_n == n_pad (single tile) or tile_n % 1024 == 0 (multi-tile)."""
    n_eff = max(int(n), 1)
    tmax = TILE_N_MAX if tile_n_req is None else max(MIN_TILE, min(int(tile_n_req), TILE_N_MAX))
    if n_eff <= min(tmax, 2 * TILE_ALIGN - 1):
        # Small batch: one tile, pad rows to a multiple of 128.
        tile = _round_up(n_eff, MIN_TILE)
        return tile, tile
    # Large batch: multi-tile.  Aim for >= 2 grid steps so the "parallel"
    # batch axis can shard across v7x's two TensorCores.
    tile = _round_up(min(tmax, pl.cdiv(n_eff, 2)), TILE_ALIGN)
    n_pad = _round_up(n_eff, tile)
    return tile, n_pad


def value_net_kernel(x_ref, w1_ref, b1_ref, w2_ref, b2_ref, w3_ref, b3_ref, o_ref,
                     *, mxu_dtype):
    # fc1 + relu: bf16 MXU inputs (cast in-kernel), f32 accumulation / bias / relu.
    x = x_ref[...].astype(mxu_dtype)
    h1 = jnp.dot(x, w1_ref[...], preferred_element_type=jnp.float32)
    h1 = jnp.maximum(h1 + b1_ref[...], 0.0)
    # fc2 + relu.
    h2 = jnp.dot(h1.astype(mxu_dtype), w2_ref[...], preferred_element_type=jnp.float32)
    h2 = jnp.maximum(h2 + b2_ref[...], 0.0)
    # fc3: 1-wide output -> VPU multiply + XLU lane reduction (skip the MXU).
    s3 = jnp.sum(h2 * w3_ref[...], axis=-1)            # (tile_n,) f32
    # Lane-dense epilogue: reshape to (tile_n/128, 128) BEFORE bias/tanh/store.
    s3 = s3.reshape(o_ref.shape) + b3_ref[...]
    o_ref[...] = (10.0 * jnp.tanh(0.001 * s3)).astype(o_ref.dtype)


def value_net_forward(state, params, *, mxu_dtype=jnp.bfloat16, tile_n=None):
    """state: [N, state_dim] float32. params: dict of weights/biases (f32).

    mxu_dtype: dtype fed to the MXU for fc1/fc2 (bf16 default, f32 optional).
    Accumulation, bias add, ReLU and tanh are always f32.
    """
    n, state_dim = state.shape
    hid1 = params["w1"].shape[1]   # 256
    hid2 = params["w2"].shape[1]   # 128

    tile, n_pad = _choose_tiling(n, tile_n)
    grid = (n_pad // tile,)

    # State is streamed in its native f32 (cast to bf16 happens in-kernel, so no
    # extra HBM pass).  Pad the batch axis; padded rows are sliced off below.
    x = state
    if n_pad != n:
        x = jnp.pad(x, ((0, n_pad - n), (0, 0)))

    # Weights for the MXU path in mxu_dtype; fc3 row + biases in f32.
    w1 = params["w1"].astype(mxu_dtype)
    w2 = params["w2"].astype(mxu_dtype)
    w3_row = params["w3"].reshape(1, hid2).astype(jnp.float32)
    b1 = params["b1"].reshape(1, hid1).astype(jnp.float32)
    b2 = params["b2"].reshape(1, hid2).astype(jnp.float32)
    b3 = params["b3"].reshape(1, 1).astype(jnp.float32)

    w_itemsize = jnp.dtype(mxu_dtype).itemsize
    cost = pl.CostEstimate(
        flops=2 * n_pad * (state_dim * hid1 + hid1 * hid2 + hid2),
        transcendentals=n_pad,
        bytes_accessed=(n_pad * state_dim * 4                      # state in (f32)
                        + n_pad * 4                                 # value out
                        + (state_dim * hid1 + hid1 * hid2) * w_itemsize
                        + (hid1 + hid2 + hid2 + 1) * 4),            # biases + w3
    )

    kernel = functools.partial(value_net_kernel, mxu_dtype=mxu_dtype)

    out = pl.pallas_call(
        kernel,
        out_shape=jax.ShapeDtypeStruct((n_pad // 128, 128), jnp.float32),
        grid=grid,
        in_specs=[
            pl.BlockSpec((tile, state_dim), lambda i: (i, 0)),   # state tile (pipelined)
            pl.BlockSpec((state_dim, hid1), lambda i: (0, 0)),   # w1 (resident)
            pl.BlockSpec((1, hid1), lambda i: (0, 0)),           # b1
            pl.BlockSpec((hid1, hid2), lambda i: (0, 0)),        # w2
            pl.BlockSpec((1, hid2), lambda i: (0, 0)),           # b2
            pl.BlockSpec((1, hid2), lambda i: (0, 0)),           # w3 (as row)
            pl.BlockSpec((1, 1), lambda i: (0, 0)),              # b3
        ],
        # Lane-dense output: each tile writes a (tile/128, 128) dense block.
        out_specs=pl.BlockSpec((tile // 128, 128), lambda i: (i, 0)),
        compiler_params=pltpu.CompilerParams(
            dimension_semantics=("parallel",),
            vmem_limit_bytes=32 * 1024 * 1024,   # covers v5e's 16 MiB scoped default
        ),
        cost_estimate=cost,
    )(x, w1, b1, w2, b2, w3_row, b3)

    # (n_pad/128, 128) -> (n_pad, 1) -> strip padding.
    return out.reshape(n_pad, 1)[:n]
    # TODO(synk): for grid==1 RL-inference batches, keeping bf16 weights resident
    # across calls (cross-pallas_call prefetch) would remove the per-call weight DMA.


def fanin_init_bound(size, fanin=None):
    # mirrors the PyTorch fanin_init: fanin defaults to size[0]
    fanin = fanin or size[0]
    return 1.0 / np.sqrt(fanin)


def init_params(key, state_dim):
    ks = jax.random.split(key, 6)

    # fc1: PyTorch weight shape (256, state_dim); custom uniform(-1/sqrt(256), ..)
    v1 = fanin_init_bound((256, state_dim))
    w1 = jax.random.uniform(ks[0], (state_dim, 256), jnp.float32, -v1, v1)
    bb1 = 1.0 / np.sqrt(state_dim)      # default Linear bias init
    b1 = jax.random.uniform(ks[1], (1, 256), jnp.float32, -bb1, bb1)

    # fc2: PyTorch weight shape (128, 256); fanin_init -> bound 1/sqrt(128)
    v2 = fanin_init_bound((128, 256))
    w2 = jax.random.uniform(ks[2], (256, 128), jnp.float32, -v2, v2)
    bb2 = 1.0 / np.sqrt(256)
    b2 = jax.random.uniform(ks[3], (1, 128), jnp.float32, -bb2, bb2)

    # fc3: uniform(-EPS, EPS) on weight; default bias init 1/sqrt(128)
    w3 = jax.random.uniform(ks[4], (128, 1), jnp.float32, -EPS, EPS)
    bb3 = 1.0 / np.sqrt(128)
    b3 = jax.random.uniform(ks[5], (1, 1), jnp.float32, -bb3, bb3)

    return {"w1": w1, "b1": b1, "w2": w2, "b2": b2, "w3": w3, "b3": b3}


def reference_forward(state, params):
    h1 = jnp.maximum(state @ params["w1"] + params["b1"], 0.0)
    h2 = jnp.maximum(h1 @ params["w2"] + params["b2"], 0.0)
    s3 = h2 @ params["w3"] + params["b3"]
    return 10.0 * jnp.tanh(0.001 * s3)


if __name__ == "__main__":
    key = jax.random.PRNGKey(0)
    k_state, k_params, k_big = jax.random.split(key, 3)

    batch = 2
    state_dim = 32
    state = jax.random.normal(k_state, (batch, state_dim), jnp.float32)
    params = init_params(k_params, state_dim)
    ref = reference_forward(state, params)

    # 1) Default bf16 MXU path, single tile (batch padded to 128 internally).
    out = jax.block_until_ready(value_net_forward(state, params))
    assert out.shape == (batch, 1)
    np.testing.assert_allclose(np.asarray(out), np.asarray(ref), rtol=3e-2, atol=1e-3)

    # 2) f32 MXU path (bit-accurate check of the kernel structure).
    out_f32 = jax.block_until_ready(
        value_net_forward(state, params, mxu_dtype=jnp.float32))
    np.testing.assert_allclose(np.asarray(out_f32), np.asarray(ref),
                               rtol=1e-5, atol=1e-5)

    # 3) multi-tile grid + tail padding exercise (grid > 1, lane-dense output).
    big_n = 2500
    big_state = jax.random.normal(k_big, (big_n, state_dim), jnp.float32)
    big_out = jax.block_until_ready(
        value_net_forward(big_state, params, tile_n=1024))
    big_ref = reference_forward(big_state, params)
    assert big_out.shape == (big_n, 1)
    np.testing.assert_allclose(np.asarray(big_out), np.asarray(big_ref),
                               rtol=3e-2, atol=1e-3)

    print("KERNEL_OK")
</pallas_src>

<mosaic_0001>
module attributes {stable_mosaic.version = 11 : i64} {
  func.func @value_net_kernel(%arg0: i32, %arg1: memref<128x32xf32, #tpu.memory_space<vmem>>, %arg2: memref<32x256xbf16, #tpu.memory_space<vmem>>, %arg3: memref<1x256xf32, #tpu.memory_space<vmem>>, %arg4: memref<256x128xbf16, #tpu.memory_space<vmem>>, %arg5: memref<1x128xf32, #tpu.memory_space<vmem>>, %arg6: memref<1x128xf32, #tpu.memory_space<vmem>>, %arg7: memref<1x1xf32, #tpu.memory_space<vmem>>, %arg8: memref<1x128xf32, #tpu.memory_space<vmem>>) attributes {dimension_semantics = [#tpu.dimension_semantics<parallel>], iteration_bounds = array<i64: 1>, scalar_prefetch = 0 : i64, scratch_operands = 0 : i64, tpu.core_type = #tpu.core_type<tc>, window_params = [{transform_indices = @transform_0, window_bounds = array<i64: 128, 32>}, {pipeline_mode = #tpu.pipeline_mode<synchronous>, transform_indices = @transform_1, window_bounds = array<i64: 32, 256>}, {pipeline_mode = #tpu.pipeline_mode<synchronous>, transform_indices = @transform_2, window_bounds = array<i64: 1, 256>}, {pipeline_mode = #tpu.pipeline_mode<synchronous>, transform_indices = @transform_3, window_bounds = array<i64: 256, 128>}, {pipeline_mode = #tpu.pipeline_mode<synchronous>, transform_indices = @transform_4, window_bounds = array<i64: 1, 128>}, {pipeline_mode = #tpu.pipeline_mode<synchronous>, transform_indices = @transform_5, window_bounds = array<i64: 1, 128>}, {pipeline_mode = #tpu.pipeline_mode<synchronous>, transform_indices = @transform_6, window_bounds = array<i64: 1, 1>}, {transform_indices = @transform_7, window_bounds = array<i64: 1, 128>}]} {
    %c0 = arith.constant 0 : index
    %c0_0 = arith.constant 0 : index
    %0 = vector.load %arg1[%c0, %c0_0] : memref<128x32xf32, #tpu.memory_space<vmem>>, vector<128x32xf32>
    %1 = arith.truncf %0 : vector<128x32xf32> to vector<128x32xbf16>
    %c0_1 = arith.constant 0 : index
    %c0_2 = arith.constant 0 : index
    %2 = vector.load %arg2[%c0_1, %c0_2] : memref<32x256xbf16, #tpu.memory_space<vmem>>, vector<32x256xbf16>
    %cst = arith.constant dense<0.000000e+00> : vector<128x256xf32>
    %3 = tpu.matmul %1, %2, %cst {dimension_numbers = #tpu.dot_dimension_numbers<[1], [0], [0], [1], [0, 0, 1, 1], [], []>} : vector<128x32xbf16>, vector<32x256xbf16>, vector<128x256xf32> -> vector<128x256xf32>
    %c0_3 = arith.constant 0 : index
    %c0_4 = arith.constant 0 : index
    %4 = vector.load %arg3[%c0_3, %c0_4] : memref<1x256xf32, #tpu.memory_space<vmem>>, vector<1x256xf32>
    %5 = vector.broadcast %4 : vector<1x256xf32> to vector<128x256xf32>
    %6 = arith.addf %3, %5 : vector<128x256xf32>
    %cst_5 = arith.constant 0.000000e+00 : f32
    %7 = vector.broadcast %cst_5 : f32 to vector<128x256xf32>
    %8 = arith.maximumf %6, %7 : vector<128x256xf32>
    %9 = arith.truncf %8 : vector<128x256xf32> to vector<128x256xbf16>
    %c0_6 = arith.constant 0 : index
    %c0_7 = arith.constant 0 : index
    %10 = vector.load %arg4[%c0_6, %c0_7] : memref<256x128xbf16, #tpu.memory_space<vmem>>, vector<256x128xbf16>
    %cst_8 = arith.constant dense<0.000000e+00> : vector<128x128xf32>
    %11 = tpu.matmul %9, %10, %cst_8 {dimension_numbers = #tpu.dot_dimension_numbers<[1], [0], [0], [1], [0, 0, 1, 1], [], []>} : vector<128x256xbf16>, vector<256x128xbf16>, vector<128x128xf32> -> vector<128x128xf32>
    %c0_9 = arith.constant 0 : index
    %c0_10 = arith.constant 0 : index
    %12 = vector.load %arg5[%c0_9, %c0_10] : memref<1x128xf32, #tpu.memory_space<vmem>>, vector<1x128xf32>
    %13 = vector.broadcast %12 : vector<1x128xf32> to vector<128x128xf32>
    %14 = arith.addf %11, %13 : vector<128x128xf32>
    %cst_11 = arith.constant 0.000000e+00 : f32
    %15 = vector.broadcast %cst_11 : f32 to vector<128x128xf32>
    %16 = arith.maximumf %14, %15 : vector<128x128xf32>
    %c0_12 = arith.constant 0 : index
    %c0_13 = arith.constant 0 : index
    %17 = vector.load %arg6[%c0_12, %c0_13] : memref<1x128xf32, #tpu.memory_space<vmem>>, vector<1x128xf32>
    %18 = vector.broadcast %17 : vector<1x128xf32> to vector<128x128xf32>
    %19 = arith.mulf %16, %18 : vector<128x128xf32>
    %cst_14 = arith.constant dense<0.000000e+00> : vector<128xf32>
    %20 = vector.multi_reduction <add>, %19, %cst_14 [1] : vector<128x128xf32> to vector<128xf32>
    %21 = vector.shape_cast %20 : vector<128xf32> to vector<1x128xf32>
    %c0_15 = arith.constant 0 : index
    %c0_16 = arith.constant 0 : index
    %22 = vector.load %arg7[%c0_15, %c0_16] : memref<1x1xf32, #tpu.memory_space<vmem>>, vector<1x1xf32>
    %23 = vector.broadcast %22 : vector<1x1xf32> to vector<1x128xf32>
    %24 = arith.addf %21, %23 : vector<1x128xf32>
    %cst_17 = arith.constant 1.000000e-03 : f32
    %25 = vector.broadcast %cst_17 : f32 to vector<1x128xf32>
    %26 = arith.mulf %25, %24 : vector<1x128xf32>
    %27 = math.tanh %26 : vector<1x128xf32>
    %cst_18 = arith.constant 1.000000e+01 : f32
    %28 = vector.broadcast %cst_18 : f32 to vector<1x128xf32>
    %29 = arith.mulf %28, %27 : vector<1x128xf32>
    %c0_19 = arith.constant 0 : index
    %c0_20 = arith.constant 0 : index
    %30 = vector.load %arg8[%c0_19, %c0_20] : memref<1x128xf32, #tpu.memory_space<vmem>>, vector<1x128xf32>
    tpu.vector_store %arg8[%c0_19, %c0_20], %29 {strides = array<i32>} : memref<1x128xf32, #tpu.memory_space<vmem>>, vector<1x128xf32>,
    return
  }
  func.func @transform_0(%arg0: i32) -> (i32, i32) {
    %c0_i32 = arith.constant 0 : i32
    %c0_i32_0 = arith.constant 0 : i32
    return %arg0, %c0_i32 : i32, i32
  }
  func.func @transform_1(%arg0: i32) -> (i32, i32) {
    %c0_i32 = arith.constant 0 : i32
    %c0_i32_0 = arith.constant 0 : i32
    %c0_i32_1 = arith.constant 0 : i32
    return %c0_i32, %c0_i32_0 : i32, i32
  }
  func.func @transform_2(%arg0: i32) -> (i32, i32) {
    %c0_i32 = arith.constant 0 : i32
    %c0_i32_0 = arith.constant 0 : i32
    %c0_i32_1 = arith.constant 0 : i32
    return %c0_i32, %c0_i32_0 : i32, i32
  }
  func.func @transform_3(%arg0: i32) -> (i32, i32) {
    %c0_i32 = arith.constant 0 : i32
    %c0_i32_0 = arith.constant 0 : i32
    %c0_i32_1 = arith.constant 0 : i32
    return %c0_i32, %c0_i32_0 : i32, i32
  }
  func.func @transform_4(%arg0: i32) -> (i32, i32) {
    %c0_i32 = arith.constant 0 : i32
    %c0_i32_0 = arith.constant 0 : i32
    %c0_i32_1 = arith.constant 0 : i32
    return %c0_i32, %c0_i32_0 : i32, i32
  }
  func.func @transform_5(%arg0: i32) -> (i32, i32) {
    %c0_i32 = arith.constant 0 : i32
    %c0_i32_0 = arith.constant 0 : i32
    %c0_i32_1 = arith.constant 0 : i32
    return %c0_i32, %c0_i32_0 : i32, i32
  }
  func.func @transform_6(%arg0: i32) -> (i32, i32) {
    %c0_i32 = arith.constant 0 : i32
    %c0_i32_0 = arith.constant 0 : i32
    %c0_i32_1 = arith.constant 0 : i32
    return %c0_i32, %c0_i32_0 : i32, i32
  }
  func.func @transform_7(%arg0: i32) -> (i32, i32) {
    %c0_i32 = arith.constant 0 : i32
    %c0_i32_0 = arith.constant 0 : i32
    return %arg0, %c0_i32 : i32, i32
  }
}

</mosaic_0001>

<bundles_post_ra>
// kernel: tpu_custom_call.1
= control target key start
LH: loop header
LB: loop body
LE: loop exit
PB: predicated region body
PF: predicated region fallthrough
CT: control target
= control target key end

     0   :  { %s1321_s0 = inlined_call_operand.vmem [shape: f32[128,32], index: 0, kind: input, shape index: {}]   ;;  %s1322_s1 = inlined_call_operand.vmem [shape: bf16[32,256], index: 1, kind: input, shape index: {}]   ;;  %s1323_s2 = inlined_call_operand.vmem [shape: f32[1,256], index: 2, kind: input, shape index: {}]   ;;  %s1324_s3 = inlined_call_operand.vmem [shape: bf16[256,128], index: 3, kind: input, shape index: {}]   ;;  %s1325_s4 = inlined_call_operand.vmem [shape: f32[1,128], index: 4, kind: input, shape index: {}]   ;;  %s1326_s5 = inlined_call_operand.vmem [shape: f32[1,128], index: 5, kind: input, shape index: {}]   ;;  %s1327_s6 = inlined_call_operand.<no memory space> [shape: f32[1,1], index: 6, kind: input, shape index: {}]   ;;  %s1328_s7 = inlined_call_operand.hbm [shape: f32[1,128], index: 7, kind: output, shape index: {}]  }
   0x1   :  { %v12_v0 = vstv %s1327_s6 }
   0x2   :  { %13 = vst [vmem:[#allocation2] sm:$0x1] %v12_v0 }
   0x3   :  { %v910_v1 = vld [vmem:[%s1322_s1 + $0x4] ss:$8 sps:$4 sm:$0xff]   ;;  %v912_v2 = vld [vmem:[%s1322_s1] ss:$8 sps:$4 sm:$0xff]   ;;  %v988_v3 = vmov 0   ;;  %vm90_vm0 = vcmask 261120  }
   0x4   :  { %147 = vmatprep.mubr.bf16.mxu0 %v988_v3  ;;  %908 = vset.pattern.permute.xlu1 %v988_v3  ;;  %v913_v4 = vld [vmem:[%s1322_s1 + $0x14] ss:$8 sps:$4 sm:$0xff]   ;;  %v915_v5 = vld [vmem:[%s1322_s1 + $0x10] ss:$8 sps:$4 sm:$0xff]   ;;  %v30_v6 = vld [vmem:[%s1321_s0] sm:$0xff] }
   0x5   :  { %115 = vmatprep.subr.bf16.mxu0 %v910_v1  ;;  %909 = vset.pattern.permute.xlu0 %v988_v3  ;;  %v31_v7 = vld [vmem:[%s1321_s0 + $0x8] sm:$0xff]  ;;  %v916_v9 = vld [vmem:[%s1324_s3 + $0x40] sm:$0xff]   ;;  %v32_v10 = vld [vmem:[%s1321_s0 + $0x10] sm:$0xff] }
   0x6   :  { %116 = vmatpush1.bf16.msra.mxu0 %v912_v2  ;;  %v46_v8 = vpack.c.bf16 %v31_v7, %v30_v6  ;;  %v33_v11 = vld [vmem:[%s1321_s0 + $0x18] sm:$0xff]  ;;  %v917_v12 = vld [vmem:[%s1324_s3] sm:$0xff]   ;;  %v918_v13 = vld [vmem:[%s1324_s3 + $0x48] sm:$0xff]   ;;  %890 = vmatprep.subr.bf16.mxu1 %v916_v9 }
   0x7   :  { %117 = vmatprep.subr.bf16.mxu0 %v913_v4  ;;  %v919_v14 = vld [vmem:[%s1324_s3 + $0x8] sm:$0xff]   ;;  %v920_v15 = vld [vmem:[%s1324_s3 + $0x50] sm:$0xff]   ;;  %898 = vmatpush3.bf16.msra.mxu1 %v917_v12  ;;  %v47_v16 = vpack.c.bf16 %v33_v11, %v32_v10  ;;  %v922_v18 = vld [vmem:[%s1324_s3 + $0x58] sm:$0xff]  }
   0x8   :  { %891 = vmatprep.subr.bf16.mxu1 %v918_v13  ;;  %v921_v17 = vld [vmem:[%s1324_s3 + $0x10] sm:$0xff]   ;;  %v34_v19 = vld [vmem:[%s1321_s0 + $0x20] sm:$0xff]  ;;  %v35_v20 = vld [vmem:[%s1321_s0 + $0x28] sm:$0xff] }
   0x9   :  { %v923_v21 = vld [vmem:[%s1324_s3 + $0x18] sm:$0xff]   ;;  %v924_v22 = vld [vmem:[%s1324_s3 + $0x60] sm:$0xff]   ;;  %v48_v23 = vpack.c.bf16 %v35_v20, %v34_v19 }
   0xa   :  { %118 = vmatpush1.bf16.msra.mxu0 %v915_v5 }
   0xb   :  { %826 = vmatprep.subr.bf16.mxu0 %v916_v9  ;;  %899 = vmatpush3.bf16.msra.mxu1 %v919_v14 }
   0xc   :  { %892 = vmatprep.subr.bf16.mxu1 %v920_v15 }
   0xd   :  { %800 = vmatmul.mubr.msk.bf16.vlgmr.msra.gmra.mrb[0].mxu0 %vm90_vm0, %v46_v8 }
   0xe   :  { %157 = vmatprep.mubr.bf16.mxu0 %v988_v3  ;;  %827 = vmatpush3.bf16.msra.mxu0 %v917_v12 }
   0xf   :  { %828 = vmatprep.subr.bf16.mxu0 %v918_v13  ;;  %900 = vmatpush3.bf16.msra.mxu1 %v921_v17 }
  0x10   :  { %893 = vmatprep.subr.bf16.mxu1 %v922_v18 }
  0x12   :  { %829 = vmatpush3.bf16.msra.mxu0 %v919_v14 }
  0x13   :  { %830 = vmatprep.subr.bf16.mxu0 %v920_v15 }
  0x15   :  { %801 = vmatmul.mubr.msk.bf16.gmra.mrb[4].mxu0 %vm90_vm0, %v47_v16 }
  0x16   :  { %167 = vmatprep.mubr.bf16.mxu0 %v988_v3  ;;  %831 = vmatpush3.bf16.msra.mxu0 %v921_v17 }
  0x17   :  { %832 = vmatprep.subr.bf16.mxu0 %v922_v18 }
  0x18   :  { %14 = vsyncpa [#allocation4], 0  ;;  %v925_v24 = vld [vmem:[%s1324_s3 + $0x20] sm:$0xff]   ;;  %v926_v25 = vld [vmem:[%s1324_s3 + $0x68] sm:$0xff]   ;;  %901 = vmatpush3.bf16.msra.mxu1 %v923_v21  ;;  %v60_v46 = vlaneseq  ;;  %vm680_vm1 = vcmask 130112   ;;  %vm687_vm2 = vcmask 195712  }
  0x19   :  { %894 = vmatprep.subr.bf16.mxu1 %v924_v22  ;;  %v36_v26 = vld [vmem:[%s1321_s0 + $0x30] sm:$0xff]  ;;  %v37_v27 = vld [vmem:[%s1321_s0 + $0x38] sm:$0xff]  ;;  %v38_v29 = vld [vmem:[%s1321_s0 + $0x40] sm:$0xff]  ;;  %vm694_vm3 = vcmask 261312   ;;  %vm701_vm4 = vcmask 326912   ;;  %vm708_vm5 = vcmask 392512  }
  0x1a   :  { %833 = vmatpush3.bf16.msra.mxu0 %v923_v21  ;;  %v49_v28 = vpack.c.bf16 %v37_v27, %v36_v26  ;;  %v39_v30 = vld [vmem:[%s1321_s0 + $0x48] sm:$0xff]  ;;  %v40_v32 = vld [vmem:[%s1321_s0 + $0x50] sm:$0xff]  ;;  %v41_v33 = vld [vmem:[%s1321_s0 + $0x58] sm:$0xff]  ;;  %v1160_v47 = vshrl.u32 %v60_v46, 7  ;;  %vm715_vm6 = vcmask 458112   ;;  %vm722_vm7 = vcmask 523712  }
  0x1b   :  { %834 = vmatprep.subr.bf16.mxu0 %v924_v22  ;;  %v50_v31 = vpack.c.bf16 %v39_v30, %v38_v29  ;;  %v51_v34 = vpack.c.bf16 %v41_v33, %v40_v32  ;;  %v42_v35 = vld [vmem:[%s1321_s0 + $0x60] sm:$0xff]  ;;  %v43_v36 = vld [vmem:[%s1321_s0 + $0x68] sm:$0xff]  ;;  %v44_v38 = vld [vmem:[%s1321_s0 + $0x70] sm:$0xff]  ;;  %vm729_vm8 = vcmask 589312   ;;  %vm736_vm9 = vcmask 654912  }
  0x1c   :  { %902 = vmatpush3.bf16.msra.mxu1 %v925_v24  ;;  %v52_v37 = vpack.c.bf16 %v43_v36, %v42_v35  ;;  %v45_v39 = vld [vmem:[%s1321_s0 + $0x78] sm:$0xff]  ;;  %v927_v41 = vld [vmem:[%s1324_s3 + $0x28] sm:$0xff]   ;;  %v928_v42 = vld [vmem:[%s1324_s3 + $0x70] sm:$0xff]   ;;  %v62_v48 = vsub.s32 0, %v1160_v47  ;;  %v66_v50 = vsub.s32 1, %v1160_v47  ;;  %vm743_vm10 = vcmask 720512  }
  0x1d   :  { %802 = vmatmul.mubr.msk.bf16.gmra.mrb[8].mxu0 %vm90_vm0, %v48_v23  ;;  %895 = vmatprep.subr.bf16.mxu1 %v926_v25  ;;  %v53_v40 = vpack.c.bf16 %v45_v39, %v44_v38  ;;  %v929_v43 = vld [vmem:[%s1324_s3 + $0x30] sm:$0xff]   ;;  %v930_v44 = vld [vmem:[%s1324_s3 + $0x78] sm:$0xff]   ;;  %v58_v49 = vld [vmem:[%s1323_s2] sm:$0x3]  ;;  %vm750_vm11 = vcmask 786112   ;;  %vm757_vm12 = vcmask 851712  }
  0x1e   :  { %177 = vmatprep.mubr.bf16.mxu0 %v988_v3  ;;  %835 = vmatpush3.bf16.msra.mxu0 %v925_v24  ;;  %v931_v45 = vld [vmem:[%s1324_s3 + $0x38] sm:$0xff]   ;;  %v1169_v51 = vrot.slane %v58_v49, %v62_v48  ;;  %v1171_v52 = vrot.slane %v58_v49, %v66_v50  ;;  %vm764_vm13 = vcmask 917312   ;;  %vm771_vm14 = vcmask 982912  }
  0x1f   :  { %836 = vmatprep.subr.bf16.mxu0 %v926_v25  ;;  %vm778_vm15 = vcmask 1048512  }
  0x20   :  { %903 = vmatpush3.bf16.msra.mxu1 %v927_v41 }
  0x21   :  { %896 = vmatprep.subr.bf16.mxu1 %v928_v42 }
  0x22   :  { %837 = vmatpush3.bf16.msra.mxu0 %v927_v41 }
  0x23   :  { %838 = vmatprep.subr.bf16.mxu0 %v928_v42 }
  0x24   :  { %904 = vmatpush3.bf16.msra.mxu1 %v929_v43 }
  0x25   :  { %803 = vmatmul.mubr.msk.bf16.gmra.mrb[12].mxu0 %vm90_vm0, %v49_v28  ;;  %897 = vmatprep.subr.bf16.mxu1 %v930_v44 }
  0x26   :  { %187 = vmatprep.mubr.bf16.mxu0 %v988_v3  ;;  %839 = vmatpush3.bf16.msra.mxu0 %v929_v43 }
  0x27   :  { %840 = vmatprep.subr.bf16.mxu0 %v930_v44 }
  0x28   :  { %905 = vmatpush3.bf16.msra.mxu1 %v931_v45 }
  0x2a   :  { %841 = vmatpush3.bf16.msra.mxu0 %v931_v45 }
  0x2d   :  { %804 = vmatmul.mubr.msk.bf16.gmra.mrb[16].mxu0 %vm90_vm0, %v50_v31 }
  0x2e   :  { %197 = vmatprep.mubr.bf16.mxu0 %v988_v3 }
  0x35   :  { %805 = vmatmul.mubr.msk.bf16.gmra.mrb[20].mxu0 %vm90_vm0, %v51_v34 }
  0x36   :  { %207 = vmatprep.mubr.bf16.mxu0 %v988_v3 }
  0x3d   :  { %806 = vmatmul.mubr.msk.bf16.gmra.mrb[24].mxu0 %vm90_vm0, %v52_v37 }
  0x3e   :  { %217 = vmatprep.mubr.bf16.mxu0 %v988_v3 }
  0x45   :  { %807 = vmatmul.mubr.msk.bf16.gmra.mrb[28].mxu0 %vm90_vm0, %v53_v40 }
  0xe0   :  { %v149_v53 = vpop.f32.mrb[0].mxu0 }
  0xe1   :  { %v150_v54 = vadd.f32 %v149_v53, %v1169_v51  ;;  %v151_v55 = vpop.f32.mrb[1].mxu0 }
  0xe2   :  { %v152_v56 = vadd.f32 %v151_v55, %v1171_v52  ;;  %v153_v57 = vpop.f32.mrb[2].mxu0 }
  0xe3   :  { %v154_v58 = vadd.f32 %v153_v57, %v1169_v51  ;;  %v155_v59 = vpop.f32.mrb[3].mxu0  ;;  %v228_v61 = vmax.f32 %v150_v54, 0.0 }
  0xe4   :  { %v156_v60 = vadd.f32 %v155_v59, %v1171_v52  ;;  %v229_v63 = vmax.f32 %v152_v56, 0.0 }
  0xe5   :  { %v230_v62 = vmax.f32 %v154_v58, 0.0 }
  0xe6   :  { %v231_v0 = vmax.f32 %v156_v60, 0.0 }
  0xe7   :  { %v260_v1 = vpack.c.bf16 %v230_v62, %v228_v61 }
  0xe8   :  { %v261_v2 = vpack.c.bf16 %v231_v0, %v229_v63  ;;  %v159_v3 = vpop.f32.mrb[4].mxu0 }
  0xe9   :  { %v160_v4 = vadd.f32 %v159_v3, %v1169_v51  ;;  %v161_v5 = vpop.f32.mrb[5].mxu0 }
  0xea   :  { %v162_v6 = vadd.f32 %v161_v5, %v1171_v52  ;;  %v163_v7 = vpop.f32.mrb[6].mxu0  ;;  %443 = vmatprep.mubr.bf16.mxu0 %v261_v2 }
  0xeb   :  { %v164_v8 = vadd.f32 %v163_v7, %v1169_v51  ;;  %v165_v9 = vpop.f32.mrb[7].mxu0  ;;  %444 = vmatmul.mubr.bf16.vlgmr.msra.gmra.mrb[32].mxu0 %v260_v1  ;;  %v232_v11 = vmax.f32 %v160_v4, 0.0 }
  0xec   :  { %v166_v10 = vadd.f32 %v165_v9, %v1171_v52  ;;  %v233_v13 = vmax.f32 %v162_v6, 0.0 }
  0xed   :  { %v234_v12 = vmax.f32 %v164_v8, 0.0 }
  0xee   :  { %v235_v14 = vmax.f32 %v166_v10, 0.0 }
  0xef   :  { %v262_v15 = vpack.c.bf16 %v234_v12, %v232_v11 }
  0xf0   :  { %v169_v16 = vpop.f32.mrb[8].mxu0  ;;  %v263_v17 = vpack.c.bf16 %v235_v14, %v233_v13 }
  0xf1   :  { %v170_v18 = vadd.f32 %v169_v16, %v1169_v51  ;;  %v171_v19 = vpop.f32.mrb[9].mxu0 }
  0xf2   :  { %v172_v20 = vadd.f32 %v171_v19, %v1171_v52  ;;  %v173_v21 = vpop.f32.mrb[10].mxu0  ;;  %451 = vmatprep.mubr.bf16.mxu1 %v263_v17 }
  0xf3   :  { %v174_v22 = vadd.f32 %v173_v21, %v1169_v51  ;;  %v175_v23 = vpop.f32.mrb[11].mxu0  ;;  %452 = vmatmul.mubr.bf16.vlgmr.msra.gmra.mrb[0].mxu1 %v262_v15  ;;  %v236_v25 = vmax.f32 %v170_v18, 0.0 }
  0xf4   :  { %v176_v24 = vadd.f32 %v175_v23, %v1171_v52  ;;  %v237_v27 = vmax.f32 %v172_v20, 0.0 }
  0xf5   :  { %v238_v26 = vmax.f32 %v174_v22, 0.0 }
  0xf6   :  { %v239_v28 = vmax.f32 %v176_v24, 0.0 }
  0xf7   :  { %v264_v29 = vpack.c.bf16 %v238_v26, %v236_v25 }
  0xf8   :  { %v265_v30 = vpack.c.bf16 %v239_v28, %v237_v27  ;;  %v179_v31 = vpop.f32.mrb[12].mxu0 }
  0xf9   :  { %v180_v32 = vadd.f32 %v179_v31, %v1169_v51  ;;  %v181_v33 = vpop.f32.mrb[13].mxu0 }
  0xfa   :  { %v182_v34 = vadd.f32 %v181_v33, %v1171_v52  ;;  %v183_v35 = vpop.f32.mrb[14].mxu0  ;;  %459 = vmatprep.mubr.bf16.mxu1 %v265_v30 }
  0xfb   :  { %v240_v36 = vmax.f32 %v180_v32, 0.0  ;;  %v184_v37 = vadd.f32 %v183_v35, %v1169_v51  ;;  %v185_v38 = vpop.f32.mrb[15].mxu0  ;;  %460 = vmatmul.mubr.bf16.gmra.mrb[4].mxu1 %v264_v29 }
  0xfc   :  { %v241_v39 = vmax.f32 %v182_v34, 0.0  ;;  %v186_v40 = vadd.f32 %v185_v38, %v1171_v52 }
  0xfd   :  { %v242_v41 = vmax.f32 %v184_v37, 0.0 }
  0xfe   :  { %v243_v42 = vmax.f32 %v186_v40, 0.0 }
  0xff   :  { %v266_v43 = vpack.c.bf16 %v242_v41, %v240_v36 }
 0x100   :  { %v267_v44 = vpack.c.bf16 %v243_v42, %v241_v39  ;;  %v189_v45 = vpop.f32.mrb[16].mxu0 }
 0x101   :  { %v190_v49 = vadd.f32 %v189_v45, %v1169_v51  ;;  %v191_v50 = vpop.f32.mrb[17].mxu0 }
 0x102   :  { %v192_v53 = vadd.f32 %v191_v50, %v1171_v52  ;;  %v193_v54 = vpop.f32.mrb[18].mxu0  ;;  %467 = vmatprep.mubr.bf16.mxu1 %v267_v44  ;;  %v1208_v44 = vld [vmem:[%s1325_s4] ss:$0 sm:$0xff]  ;;  %s989_s4 = smov [#allocation3]  }
 0x103   :  { %v244_v55 = vmax.f32 %v190_v49, 0.0  ;;  %v194_v56 = vadd.f32 %v193_v54, %v1169_v51  ;;  %v195_v57 = vpop.f32.mrb[19].mxu0  ;;  %468 = vmatmul.mubr.bf16.gmra.mrb[8].mxu1 %v266_v43 }
 0x104   :  { %v245_v58 = vmax.f32 %v192_v53, 0.0  ;;  %v196_v59 = vadd.f32 %v195_v57, %v1171_v52 }
 0x105   :  { %v246_v60 = vmax.f32 %v194_v56, 0.0 }
 0x106   :  { %v247_v61 = vmax.f32 %v196_v59, 0.0 }
 0x107   :  { %v268_v62 = vpack.c.bf16 %v246_v60, %v244_v55 }
 0x108   :  { %v269_v63 = vpack.c.bf16 %v247_v61, %v245_v58  ;;  %v199_v0 = vpop.f32.mrb[20].mxu0 }
 0x109   :  { %v200_v1 = vadd.f32 %v199_v0, %v1169_v51  ;;  %v201_v2 = vpop.f32.mrb[21].mxu0 }
 0x10a   :  { %v202_v3 = vadd.f32 %v201_v2, %v1171_v52  ;;  %v203_v4 = vpop.f32.mrb[22].mxu0  ;;  %475 = vmatprep.mubr.bf16.mxu1 %v269_v63 }
 0x10b   :  { %v248_v5 = vmax.f32 %v200_v1, 0.0  ;;  %v204_v6 = vadd.f32 %v203_v4, %v1169_v51  ;;  %v205_v7 = vpop.f32.mrb[23].mxu0  ;;  %476 = vmatmul.mubr.bf16.gmra.mrb[12].mxu1 %v268_v62 }
 0x10c   :  { %v249_v8 = vmax.f32 %v202_v3, 0.0  ;;  %v206_v9 = vadd.f32 %v205_v7, %v1171_v52 }
 0x10d   :  { %v250_v10 = vmax.f32 %v204_v6, 0.0 }
 0x10e   :  { %v251_v11 = vmax.f32 %v206_v9, 0.0 }
 0x10f   :  { %v270_v12 = vpack.c.bf16 %v250_v10, %v248_v5 }
 0x110   :  { %v271_v13 = vpack.c.bf16 %v251_v11, %v249_v8  ;;  %v209_v14 = vpop.f32.mrb[24].mxu0 }
 0x111   :  { %v210_v15 = vadd.f32 %v209_v14, %v1169_v51  ;;  %v211_v16 = vpop.f32.mrb[25].mxu0 }
 0x112   :  { %v212_v17 = vadd.f32 %v211_v16, %v1171_v52  ;;  %v213_v18 = vpop.f32.mrb[26].mxu0  ;;  %483 = vmatprep.mubr.bf16.mxu1 %v271_v13 }
 0x113   :  { %v252_v19 = vmax.f32 %v210_v15, 0.0  ;;  %v214_v20 = vadd.f32 %v213_v18, %v1169_v51  ;;  %v215_v21 = vpop.f32.mrb[27].mxu0  ;;  %484 = vmatmul.mubr.bf16.gmra.mrb[16].mxu1 %v270_v12 }
 0x114   :  { %v253_v22 = vmax.f32 %v212_v17, 0.0  ;;  %v216_v23 = vadd.f32 %v215_v21, %v1171_v52 }
 0x115   :  { %v254_v24 = vmax.f32 %v214_v20, 0.0 }
 0x116   :  { %v255_v25 = vmax.f32 %v216_v23, 0.0 }
 0x117   :  { %v272_v26 = vpack.c.bf16 %v254_v24, %v252_v19 }
 0x118   :  { %v273_v27 = vpack.c.bf16 %v255_v25, %v253_v22  ;;  %v219_v28 = vpop.f32.mrb[28].mxu0 }
 0x119   :  { %v220_v29 = vadd.f32 %v219_v28, %v1169_v51  ;;  %v221_v30 = vpop.f32.mrb[29].mxu0 }
 0x11a   :  { %v222_v31 = vadd.f32 %v221_v30, %v1171_v52  ;;  %v223_v32 = vpop.f32.mrb[30].mxu0  ;;  %491 = vmatprep.mubr.bf16.mxu1 %v273_v27 }
 0x11b   :  { %v256_v33 = vmax.f32 %v220_v29, 0.0  ;;  %v224_v34 = vadd.f32 %v223_v32, %v1169_v51  ;;  %v225_v35 = vpop.f32.mrb[31].mxu0  ;;  %492 = vmatmul.mubr.bf16.gmra.mrb[20].mxu1 %v272_v26 }
 0x11c   :  { %v257_v36 = vmax.f32 %v222_v31, 0.0  ;;  %v226_v37 = vadd.f32 %v225_v35, %v1171_v52  ;;  %v1214_v52 = vld [vmem:[%s1326_s5] ss:$0 sm:$0xff]  ;;  %s788_s5 = sshll.u32 %s989_s4, 4  ;;  %s789_s5 = int_to_ptr.vmem [resolvable:$true] %s788_s5 }
 0x11d   :  { %v258_v38 = vmax.f32 %v224_v34, 0.0  ;;  %s964_s26 = scalar_lea.vmem %s789_s5, 16  ;;  %s968_s27 = scalar_lea.vmem %s789_s5, 32 }
 0x11e   :  { %v259_v39 = vmax.f32 %v226_v37, 0.0  ;;  %p965_p0 = scmp.ne.s32.totalorder %s789_s5, %s964_s26  ;;  %p969_p1 = scmp.lt.s32.totalorder %s789_s5, %s789_s5 }
 0x11f   :  { %v274_v40 = vpack.c.bf16 %v258_v38, %v256_v33  ;;  %p970_p2 = scmp.lt.s32.totalorder %s968_s27, %s964_s26 }
 0x120   :  { %v275_v41 = vpack.c.bf16 %v259_v39, %v257_v36 }
 0x121   :  { %p971_p3 = por %p970_p2, %p969_p1 }
 0x122   :  { %499 = vmatprep.mubr.bf16.mxu1 %v275_v41 }
 0x123   :  { %500 = vmatmul.mubr.bf16.gmra.mrb[24].mxu1 %v274_v40  ;;  %p972_p4 = pnand %p971_p3, %p965_p0 }
 0x1be   :  { %v842_v42 = vpop.f32.mrb[32].mxu0 }
 0x1bf   :  { %v843_v43 = vpop.f32.mrb[33].mxu0 }
 0x1c0   :  { %v844_v45 = vadd.f32 %v843_v43, %v842_v42  ;;  %v845_v51 = vpop.f32.mrb[34].mxu0 }
 0x1c1   :  { %v846_v49 = vpop.f32.mrb[35].mxu0 }
 0x1c2   :  { %v847_v50 = vadd.f32 %v846_v49, %v845_v51  ;;  %v446_v53 = vadd.f32 %v844_v45, %v1208_v44  ;;  %v579_v51 = vld [vmem:[#allocation2] sm:$0x1] }
 0x1c4   :  { %v449_v54 = vadd.f32 %v847_v50, %v1208_v44  ;;  %v508_v55 = vmax.f32 %v446_v53, 0.0 }
 0x1c6   :  { %v509_v56 = vmax.f32 %v449_v54, 0.0  ;;  %v848_v57 = vpop.f32.mrb[0].mxu1  ;;  %v531_v58 = vmul.f32 %v1214_v52, %v508_v55 }
 0x1c7   :  { %v849_v59 = vpop.f32.mrb[1].mxu1 }
 0x1c8   :  { %v850_v60 = vadd.f32 %v849_v59, %v848_v57  ;;  %v851_v61 = vpop.f32.mrb[2].mxu1  ;;  %547 = vadd.xlane.f32.xlu0 %v531_v58  ;;  %v532_v0 = vmul.f32 %v1214_v52, %v509_v56 }
 0x1c9   :  { %v852_v62 = vpop.f32.mrb[3].mxu1 }
 0x1ca   :  { %v853_v63 = vadd.f32 %v852_v62, %v851_v61  ;;  %v454_v1 = vadd.f32 %v850_v60, %v1208_v44 }
 0x1cc   :  { %v457_v2 = vadd.f32 %v853_v63, %v1208_v44  ;;  %549 = vadd.xlane.f32.xlu0 %v532_v0  ;;  %v510_v3 = vmax.f32 %v454_v1, 0.0 }
 0x1ce   :  { %v511_v4 = vmax.f32 %v457_v2, 0.0  ;;  %v854_v5 = vpop.f32.mrb[4].mxu1  ;;  %v533_v6 = vmul.f32 %v1214_v52, %v510_v3 }
 0x1cf   :  { %v855_v7 = vpop.f32.mrb[5].mxu1 }
 0x1d0   :  { %v856_v8 = vadd.f32 %v855_v7, %v854_v5  ;;  %v857_v9 = vpop.f32.mrb[6].mxu1  ;;  %551 = vadd.xlane.f32.xlu1 %v533_v6  ;;  %v534_v13 = vmul.f32 %v1214_v52, %v511_v4 }
 0x1d1   :  { %v858_v10 = vpop.f32.mrb[7].mxu1 }
 0x1d2   :  { %v462_v11 = vadd.f32 %v856_v8, %v1208_v44  ;;  %v859_v12 = vadd.f32 %v858_v10, %v857_v9 }
 0x1d4   :  { %v512_v14 = vmax.f32 %v462_v11, 0.0  ;;  %v465_v15 = vadd.f32 %v859_v12, %v1208_v44  ;;  %553 = vadd.xlane.f32.xlu1 %v534_v13 }
 0x1d6   :  { %v513_v16 = vmax.f32 %v465_v15, 0.0  ;;  %v860_v17 = vpop.f32.mrb[8].mxu1  ;;  %v535_v18 = vmul.f32 %v1214_v52, %v512_v14 }
 0x1d7   :  { %v861_v19 = vpop.f32.mrb[9].mxu1 }
 0x1d8   :  { %v862_v20 = vadd.f32 %v861_v19, %v860_v17  ;;  %555 = vadd.xlane.f32.xlu0 %v535_v18  ;;  %v863_v21 = vpop.f32.mrb[10].mxu1  ;;  %v536_v22 = vmul.f32 %v1214_v52, %v513_v16 }
 0x1d9   :  { %v864_v23 = vpop.f32.mrb[11].mxu1 }
 0x1da   :  { %v470_v24 = vadd.f32 %v862_v20, %v1208_v44  ;;  %557 = vadd.xlane.f32.xlu1 %v536_v22  ;;  %v865_v25 = vadd.f32 %v864_v23, %v863_v21 }
 0x1dc   :  { %v514_v26 = vmax.f32 %v470_v24, 0.0  ;;  %v473_v27 = vadd.f32 %v865_v25, %v1208_v44 }
 0x1de   :  { %v515_v28 = vmax.f32 %v473_v27, 0.0  ;;  %v866_v29 = vpop.f32.mrb[12].mxu1  ;;  %v537_v30 = vmul.f32 %v1214_v52, %v514_v26 }
 0x1df   :  { %v867_v31 = vpop.f32.mrb[13].mxu1 }
 0x1e0   :  { %v868_v32 = vadd.f32 %v867_v31, %v866_v29  ;;  %559 = vadd.xlane.f32.xlu0 %v537_v30  ;;  %v869_v33 = vpop.f32.mrb[14].mxu1  ;;  %v538_v34 = vmul.f32 %v1214_v52, %v515_v28 }
 0x1e1   :  { %v870_v35 = vpop.f32.mrb[15].mxu1 }
 0x1e2   :  { %v478_v36 = vadd.f32 %v868_v32, %v1208_v44  ;;  %v871_v37 = vadd.f32 %v870_v35, %v869_v33 }
 0x1e4   :  { %v516_v38 = vmax.f32 %v478_v36, 0.0  ;;  %v481_v39 = vadd.f32 %v871_v37, %v1208_v44  ;;  %561 = vadd.xlane.f32.xlu0 %v538_v34 }
 0x1e6   :  { %v517_v40 = vmax.f32 %v481_v39, 0.0  ;;  %v872_v41 = vpop.f32.mrb[16].mxu1  ;;  %v539_v42 = vmul.f32 %v1214_v52, %v516_v38 }
 0x1e7   :  { %v873_v43 = vpop.f32.mrb[17].mxu1 }
 0x1e8   :  { %v874_v45 = vadd.f32 %v873_v43, %v872_v41  ;;  %563 = vadd.xlane.f32.xlu0 %v539_v42  ;;  %v875_v49 = vpop.f32.mrb[18].mxu1  ;;  %v540_v50 = vmul.f32 %v1214_v52, %v517_v40  ;;  %v1257_v41 = vand.u32 127, %v60_v46 }
 0x1e9   :  { %v876_v53 = vpop.f32.mrb[19].mxu1 }
 0x1ea   :  { %v486_v54 = vadd.f32 %v874_v45, %v1208_v44  ;;  %v877_v55 = vadd.f32 %v876_v53, %v875_v49  ;;  %v682_v46 = vadd.s32 4294967280, %v1257_v41 }
 0x1eb   :  { %582 = vperm.xlu1 %908, %v579_v51   ;;  %v675_v51 = vadd.s32 4294967288, %v1257_v41 }
 0x1ec   :  { %v518_v56 = vmax.f32 %v486_v54, 0.0  ;;  %565 = vadd.xlane.f32.xlu0 %v540_v50  ;;  %v489_v57 = vadd.f32 %v877_v55, %v1208_v44  ;;  %v673_v55 = vsub.s32 %v1257_v41, %v1160_v47 }
 0x1ee   :  { %v519_v58 = vmax.f32 %v489_v57, 0.0  ;;  %v878_v59 = vpop.f32.mrb[20].mxu1  ;;  %v541_v60 = vmul.f32 %v1214_v52, %v518_v56  ;;  %v678_v56 = vsub.s32 %v675_v51, %v1160_v47  ;;  %v724_v51 = vadd.s32 4294967232, %v1257_v41 }
 0x1ef   :  { %v879_v61 = vpop.f32.mrb[21].mxu1 }
 0x1f0   :  { %v880_v62 = vadd.f32 %v879_v61, %v878_v59  ;;  %567 = vadd.xlane.f32.xlu0 %v541_v60  ;;  %v881_v63 = vpop.f32.mrb[22].mxu1  ;;  %v542_v0 = vmul.f32 %v1214_v52, %v519_v58 }
 0x1f1   :  { %v882_v1 = vpop.f32.mrb[23].mxu1 }
 0x1f2   :  { %v494_v2 = vadd.f32 %v880_v62, %v1208_v44  ;;  %v883_v3 = vadd.f32 %v882_v1, %v881_v63 }
 0x1f4   :  { %v520_v4 = vmax.f32 %v494_v2, 0.0  ;;  %v497_v5 = vadd.f32 %v883_v3, %v1208_v44  ;;  %v685_v3 = vsub.s32 %v682_v46, %v1160_v47 }
 0x1f6   :  { %v521_v6 = vmax.f32 %v497_v5, 0.0  ;;  %v884_v7 = vpop.f32.mrb[24].mxu1  ;;  %v543_v8 = vmul.f32 %v1214_v52, %v520_v4  ;;  %v689_v4 = vadd.s32 4294967272, %v1257_v41 }
 0x1f7   :  { %v885_v9 = vpop.f32.mrb[25].mxu1 }
 0x1f8   :  { %v886_v10 = vadd.f32 %v885_v9, %v884_v7  ;;  %571 = vadd.xlane.f32.xlu0 %v543_v8  ;;  %v887_v11 = vpop.f32.mrb[26].mxu1  ;;  %v544_v12 = vmul.f32 %v1214_v52, %v521_v6 }
 0x1f9   :  { %v888_v13 = vpop.f32.mrb[27].mxu1 }
 0x1fa   :  { %v502_v14 = vadd.f32 %v886_v10, %v1208_v44  ;;  %v889_v15 = vadd.f32 %v888_v13, %v887_v11  ;;  %v696_v13 = vadd.s32 4294967264, %v1257_v41 }
 0x1fc   :  { %v522_v16 = vmax.f32 %v502_v14, 0.0  ;;  %v505_v17 = vadd.f32 %v889_v15, %v1208_v44  ;;  %573 = vadd.xlane.f32.xlu0 %v544_v12 }
 0x1fe   :  { %v523_v18 = vmax.f32 %v505_v17, 0.0  ;;  %v545_v19 = vmul.f32 %v1214_v52, %v522_v16  ;;  %v692_v17 = vsub.s32 %v689_v4, %v1160_v47 }
 0x200   :  { %575 = vadd.xlane.f32.xlu0 %v545_v19  ;;  %v546_v20 = vmul.f32 %v1214_v52, %v523_v18 }
 0x204   :  { %577 = vadd.xlane.f32.xlu0 %v546_v20 }
 0x20f   :  { %569 = vadd.xlane.f32.xlu1 %v542_v0 }
 0x255   :  { %v548_v21 = vpop.xlane.xlu0 %547 }
 0x259   :  { %v550_v23 = vpop.xlane.xlu0 %549 }
 0x25d   :  { %v552_v22 = vpop.xlane.xlu1 %551 }
 0x261   :  { %v554_v24 = vpop.xlane.xlu1 %553 }
 0x265   :  { %v556_v25 = vpop.xlane.xlu0 %555 }
 0x267   :  { %v558_v26 = vpop.xlane.xlu1 %557 }
 0x26b   :  { %v583_v29 = vpop.permute.xlu1 %582 }
 0x26c   :  { %v1249_v44 = vrot.slane %v583_v29, %v62_v48  ;;  %v699_v29 = vsub.s32 %v696_v13, %v1160_v47 }
 0x26d   :  { %v560_v27 = vpop.xlane.xlu0 %559 }
 0x26e   :  { %v589_v31 = vadd.f32 %v1249_v44, %v548_v21  ;;  %v590_v52 = vadd.f32 %v1249_v44, %v550_v23  ;;  %v591_v33 = vadd.f32 %v1249_v44, %v552_v22  ;;  %v592_v38 = vadd.f32 %v1249_v44, %v554_v24 }
 0x26f   :  { %v593_v40 = vadd.f32 %v1249_v44, %v556_v25  ;;  %v594_v42 = vadd.f32 %v1249_v44, %v558_v26  ;;  %v595_v50 = vadd.f32 %v1249_v44, %v560_v27  ;;  %v703_v24 = vadd.s32 4294967256, %v1257_v41 }
 0x270   :  { %v605_v34 = vmul.f32 0.001, %v589_v31  ;;  %v606_v35 = vmul.f32 0.001, %v590_v52  ;;  %v607_v37 = vmul.f32 0.001, %v591_v33 }
 0x271   :  { %v562_v28 = vpop.xlane.xlu0 %561  ;;  %v608_v48 = vmul.f32 0.001, %v592_v38  ;;  %v609_v45 = vmul.f32 0.001, %v593_v40  ;;  %v610_v54 = vmul.f32 0.001, %v594_v42  ;;  %v706_v38 = vsub.s32 %v703_v24, %v1160_v47 }
 0x272   :  { %932 = vtanh.f32 %v605_v34  ;;  %v596_v57 = vadd.f32 %v1249_v44, %v562_v28  ;;  %v611_v62 = vmul.f32 0.001, %v595_v50  ;;  %v710_v52 = vadd.s32 4294967248, %v1257_v41 }
 0x273   :  { %934 = vtanh.f32 %v606_v35  ;;  %v717_v42 = vadd.s32 4294967240, %v1257_v41 }
 0x274   :  { %936 = vtanh.f32 %v607_v37  ;;  %v612_v5 = vmul.f32 0.001, %v596_v57 }
 0x275   :  { %v564_v30 = vpop.xlane.xlu0 %563  ;;  %938 = vtanh.f32 %v608_v48  ;;  %v713_v48 = vsub.s32 %v710_v52, %v1160_v47  ;;  %v720_v57 = vsub.s32 %v717_v42, %v1160_v47 }
 0x276   :  { %940 = vtanh.f32 %v609_v45  ;;  %v597_v63 = vadd.f32 %v1249_v44, %v564_v30 }
 0x277   :  { %942 = vtanh.f32 %v610_v54 }
 0x278   :  { %944 = vtanh.f32 %v611_v62  ;;  %v613_v8 = vmul.f32 0.001, %v597_v63 }
 0x279   :  { %v566_v32 = vpop.xlane.xlu0 %565  ;;  %946 = vtanh.f32 %v612_v5  ;;  %v752_v5 = vadd.s32 4294967200, %v1257_v41 }
 0x27a   :  { %v598_v0 = vadd.f32 %v1249_v44, %v566_v32  ;;  %948 = vtanh.f32 %v613_v8  ;;  %v759_v8 = vadd.s32 4294967192, %v1257_v41 }
 0x27c   :  { %v933_v49 = vpop.eup %932  ;;  %v614_v10 = vmul.f32 0.001, %v598_v0  ;;  %v745_v0 = vadd.s32 4294967208, %v1257_v41 }
 0x27d   :  { %v568_v36 = vpop.xlane.xlu0 %567  ;;  %v935_v53 = vpop.eup %934  ;;  %v637_v60 = vmul.f32 10.0, %v933_v49 }
 0x27e   :  { %v937_v59 = vpop.eup %936  ;;  %v638_v61 = vmul.f32 10.0, %v935_v53  ;;  %v599_v1 = vadd.f32 %v1249_v44, %v568_v36  ;;  %950 = vtanh.f32 %v614_v10  ;;  %v731_v53 = vadd.s32 4294967224, %v1257_v41 }
 0x27f   :  { %v639_v2 = vmul.f32 10.0, %v937_v59  ;;  %v674_v6 = vrot.slane %v637_v60, %v673_v55  ;;  %v939_v9 = vpop.eup %938  ;;  %v738_v55 = vadd.s32 4294967216, %v1257_v41  ;;  %v727_v60 = vsub.s32 %v724_v51, %v1160_v47 }
 0x280   :  { %v679_v7 = vrot.slane %v638_v61, %v678_v56  ;;  %v615_v14 = vmul.f32 0.001, %v599_v1  ;;  %v941_v19 = vpop.eup %940  ;;  %v640_v20 = vmul.f32 10.0, %v939_v9  ;;  %v734_v62 = vsub.s32 %v731_v53, %v1160_v47 }
 0x281   :  { %v686_v16 = vrot.slane %v639_v2, %v685_v3  ;;  %v943_v26 = vpop.eup %942  ;;  %v641_v27 = vmul.f32 10.0, %v941_v19  ;;  %v741_v3 = vsub.s32 %v738_v55, %v1160_v47  ;;  %v766_v9 = vadd.s32 4294967184, %v1257_v41 }
 0x282   :  { %v681_v21 = vsel %vm680_vm1, %v679_v7, %v674_v6  ;;  %952 = vtanh.f32 %v615_v14  ;;  %v693_v31 = vrot.slane %v640_v20, %v692_v17  ;;  %v945_v35 = vpop.eup %944  ;;  %v642_v36 = vmul.f32 10.0, %v943_v26 }
 0x283   :  { %v688_v28 = vsel %vm687_vm2, %v686_v16, %v681_v21  ;;  %v748_v16 = vsub.s32 %v745_v0, %v1160_v47  ;;  %v755_v19 = vsub.s32 %v752_v5, %v1160_v47  ;;  %v762_v21 = vsub.s32 %v759_v8, %v1160_v47 }
 0x284   :  { %v695_v37 = vsel %vm694_vm3, %v693_v31, %v688_v28  ;;  %v707_v50 = vrot.slane %v642_v36, %v706_v38 }
 0x285   :  { %v572_v39 = vpop.xlane.xlu0 %571 }
 0x286   :  { %v601_v11 = vadd.f32 %v1249_v44, %v572_v39  ;;  %v700_v39 = vrot.slane %v641_v27, %v699_v29 }
 0x288   :  { %v617_v23 = vmul.f32 0.001, %v601_v11  ;;  %v702_v45 = vsel %vm701_vm4, %v700_v39, %v695_v37 }
 0x289   :  { %v574_v43 = vpop.xlane.xlu0 %573  ;;  %v709_v46 = vsel %vm708_vm5, %v707_v50, %v702_v45 }
 0x28a   :  { %v602_v15 = vadd.f32 %v1249_v44, %v574_v43  ;;  %954 = vtanh.f32 %v617_v23  ;;  %v947_v43 = vpop.eup %946  ;;  %v769_v23 = vsub.s32 %v766_v9, %v1160_v47 }
 0x28b   :  { %v949_v49 = vpop.eup %948 }
 0x28c   :  { %v618_v25 = vmul.f32 0.001, %v602_v15  ;;  %v951_v54 = vpop.eup %950  ;;  %v645_v61 = vmul.f32 10.0, %v949_v49 }
 0x28d   :  { %v576_v58 = vpop.xlane.xlu0 %575  ;;  %v953_v56 = vpop.eup %952  ;;  %v646_v63 = vmul.f32 10.0, %v951_v54 }
 0x28e   :  { %v603_v18 = vadd.f32 %v1249_v44, %v576_v58  ;;  %956 = vtanh.f32 %v618_v25  ;;  %v644_v58 = vmul.f32 10.0, %v947_v43  ;;  %v647_v4 = vmul.f32 10.0, %v953_v56 }
 0x28f   :  { %v728_v11 = vrot.slane %v645_v61, %v727_v60  ;;  %v735_v15 = vrot.slane %v646_v63, %v734_v62 }
 0x290   :  { %v619_v30 = vmul.f32 0.001, %v603_v18  ;;  %v721_v7 = vrot.slane %v644_v58, %v720_v57  ;;  %v742_v18 = vrot.slane %v647_v4, %v741_v3 }
 0x291   :  { %v578_v12 = vpop.xlane.xlu0 %577 }
 0x292   :  { %v604_v22 = vadd.f32 %v1249_v44, %v578_v12  ;;  %958 = vtanh.f32 %v619_v30  ;;  %v773_v12 = vadd.s32 4294967176, %v1257_v41 }
 0x294   :  { %v620_v32 = vmul.f32 0.001, %v604_v22  ;;  %v955_v1 = vpop.eup %954  ;;  %v776_v26 = vsub.s32 %v773_v12, %v1160_v47 }
 0x295   :  { %v649_v20 = vmul.f32 10.0, %v955_v1 }
 0x296   :  { %960 = vtanh.f32 %v620_v32 }
 0x297   :  { %v756_v31 = vrot.slane %v649_v20, %v755_v19 }
 0x298   :  { %v957_v6 = vpop.eup %956 }
 0x299   :  { %v650_v22 = vmul.f32 10.0, %v957_v6 }
 0x29b   :  { %v763_v52 = vrot.slane %v650_v22, %v762_v21 }
 0x29c   :  { %v570_v33 = vpop.xlane.xlu1 %569  ;;  %v959_v10 = vpop.eup %958 }
 0x29d   :  { %v600_v34 = vadd.f32 %v1249_v44, %v570_v33  ;;  %v643_v44 = vmul.f32 10.0, %v945_v35  ;;  %v651_v25 = vmul.f32 10.0, %v959_v10 }
 0x29f   :  { %v616_v40 = vmul.f32 0.001, %v600_v34  ;;  %v714_v59 = vrot.slane %v643_v44, %v713_v48  ;;  %v770_v33 = vrot.slane %v651_v25, %v769_v23 }
 0x2a0   :  { %v961_v13 = vpop.eup %960 }
 0x2a1   :  { %962 = vtanh.f32 %v616_v40  ;;  %v716_v2 = vsel %vm715_vm6, %v714_v59, %v709_v46  ;;  %v652_v28 = vmul.f32 10.0, %v961_v13 }
 0x2a2   :  { %v723_v14 = vsel %vm722_vm7, %v721_v7, %v716_v2 }
 0x2a3   :  { %v730_v41 = vsel %vm729_vm8, %v728_v11, %v723_v14  ;;  %v777_v35 = vrot.slane %v652_v28, %v776_v26 }
 0x2a4   :  { %v737_v27 = vsel %vm736_vm9, %v735_v15, %v730_v41 }
 0x2a5   :  { %v744_v30 = vsel %vm743_vm10, %v742_v18, %v737_v27 }
 0x2ab   :  { %v963_v17 = vpop.eup %962 }
 0x2ac   :  { %v648_v24 = vmul.f32 10.0, %v963_v17 }
 0x2ae   :  { %v749_v29 = vrot.slane %v648_v24, %v748_v16 }
 0x2b0   :  { %v751_v32 = vsel %vm750_vm11, %v749_v29, %v744_v30 }
 0x2b1   :  { %v758_v34 = vsel %vm757_vm12, %v756_v31, %v751_v32 }
 0x2b2   :  { %v765_v47 = vsel %vm764_vm13, %v763_v52, %v758_v34 }
 0x2b3   :  { %v772_v36 = vsel %vm771_vm14, %v770_v33, %v765_v47 }
 0x2b4   :  { %v779_v37 = vsel %vm778_vm15, %v777_v35, %v772_v36 }
 0x2b5   :  { %781 = vst [vmem:[#allocation3] sm:$0x1] %v779_v37 }
 0x2b6   :  { %975 = shalt.err (!%p972_p4)
}
 0x2b7   :  { %s976_s30 = scalar_lea.hbm %s1328_s7, 16 }
 0x2b8   :  { %p977_p5 = scmp.ne.s32.totalorder %s1328_s7, %s976_s30  ;;  %p980_p6 = scmp.lt.u32.totalorder %s976_s30, %s1328_s7 }
 0x2ba   :  { %p982_p7 = pnand %p980_p6, %p977_p5 }
 0x2bc   :  { %985 = shalt.err (!%p982_p7)
}
 0x2bd   :  { %791 = dma.vmem_to_hbm [thread:$0]  %s789_s5, 16, %s1328_s7, [#allocation4]  }
 0x2be   :  { %986 = dma.done.wait [#allocation4], 16  }
 0x2bf   :  { %987 = vsyncadd [#allocation4], 4294967280 }
 0x2c0   :  { %795 = vsyncpa [#allocation4], 1 }

</bundles_post_ra>
